<compile_context>
chip_gen: v7x
topology: tpu7x:2x2x1
jax: 0.10.0
libtpu: 0.0.40
codegen_flags: <defaults>
</compile_context>

<pallas_src>
import math

import jax
import jax.numpy as jnp
from jax.experimental import pallas as pl
from jax.experimental.pallas import tpu as pltpu


def _cdiv(a, b):
    return -(-a // b)


def _round_up(n, m):
    return _cdiv(n, m) * m


def _gelu_tanh(x):
    # TODO(synk): the reference uses a custom GELU class (definition not shown); we use the
    # tanh-approximate GELU (PyTorch's nn.GELU default is the erf form -> tiny numeric delta).
    c = math.sqrt(2.0 / math.pi)
    return 0.5 * x * (1.0 + jnp.tanh(c * (x + 0.044715 * x * x * x)))


# ----------------------------------------------------------------------------------------------
# Kernel.  grid = (batch_tiles, k_tiles); the reduction over D = seq_len*enc_in is innermost.
#   x_ref:(tm,tk) stats_ref:(tm,E)  wa_ref:(tk,H)  ws_ref:(E,H)  b1_ref:(1,H)f32  w2_ref:(H,O)
#   o_ref:(tm,O)f32  acc_ref:(tm,H)f32 scratch
# ----------------------------------------------------------------------------------------------
def projector_kernel(x_ref, stats_ref, wa_ref, ws_ref, b1_ref, w2_ref, o_ref, acc_ref):
    k = pl.program_id(1)

    @pl.when(k == 0)
    def _init():
        acc_ref[...] = jnp.zeros_like(acc_ref)

    # Partial contraction of this (tm, tk) x (tk, H) slab; bf16 operands, f32 accumulation.
    acc_ref[...] += jnp.dot(x_ref[...], wa_ref[...], preferred_element_type=jnp.float32)

    @pl.when(k == pl.num_programs(1) - 1)
    def _finalize():
        h = (acc_ref[...]
             + jnp.dot(stats_ref[...], ws_ref[...], preferred_element_type=jnp.float32)
             + b1_ref[...].astype(jnp.float32))
        h = _gelu_tanh(h)  # keep activation math in f32 (v5e has no bf16 VALU/EUP)
        o_ref[...] = jnp.dot(h.astype(w2_ref.dtype), w2_ref[...],
                             preferred_element_type=jnp.float32).astype(o_ref.dtype)


# ----------------------------------------------------------------------------------------------
# One-time host-side weight fusion (call once for inference; keep out of the per-step path).
# ----------------------------------------------------------------------------------------------
def fuse_projector_weights(conv_w, w1, b1, w2, *, compute_dtype=jnp.bfloat16):
    """conv_w:(S,K) squeezed Conv1d weight; w1:(2E,H), b1:(H,), w2:(H,O) input-major Linears."""
    S, K = conv_w.shape
    two_e, H = w1.shape
    E = two_e // 2
    pad = 1  # the module hardcodes padding=1 (torch >= 1.5)
    # circular conv preserves length (so cat([conv, stats]) is shape-consistent) only for K == 3.
    assert K == 2 * pad + 1, "Projector is only shape-consistent for kernel_size=3"

    w1_conv, w1_stats = w1[:E], w1[E:]
    # conv[b,l] = sum_{s,k} conv_w[s,k] * x[b,s,(l+k-pad) mod E]
    # => (conv @ w1_conv)[b,h] = sum_{s,m} x[b,s,m] * A[s,m,h],
    #    A[s,m,h] = sum_k conv_w[s,k] * w1_conv[(m-k+pad) mod E, h]
    wa = sum(conv_w[:, k][:, None, None] * jnp.roll(w1_conv, k - pad, axis=0)[None]
             for k in range(K))                                   # (S, E, H)
    return {
        "wa": wa.reshape(S * E, H).astype(compute_dtype),          # fused conv + Linear1[:E]
        "ws": w1_stats.astype(compute_dtype),                      # Linear1[E:]
        "b1": b1.reshape(1, H).astype(jnp.float32),
        "w2": w2.astype(compute_dtype),
    }


def _vmem_budget_bytes():
    try:
        cap = pltpu.get_tpu_info().vmem_capacity_bytes   # 128 MiB (v5e/v6e) / 64 MiB per TC (v7x)
    except Exception:                                    # query unavailable -> assume the smallest
        cap = 64 * 1024 * 1024
    return (cap * 3) // 4                                # headroom for compiler scratch


def _select_tiles(B, D, E, H, O, x_bytes, w_bytes, budget, block_b, block_k):
    row = 16 if x_bytes < 4 else 8          # bf16 packs 2 rows / sublane -> 16-row alignment
    const_w = 2 * (E * H * w_bytes + H * 4 + H * O * w_bytes)   # ws/b1/w2, counted double-buffered

    # --- contraction tile tk over D = seq_len*enc_in ---
    if block_k is not None:
        tk = block_k
    elif 2 * D * H * w_bytes + const_w <= budget // 2:
        tk = D                                # whole fused weight stays VMEM-resident
    else:
        tk = (budget // 2 - const_w) // (2 * H * w_bytes)
    if tk >= D:
        tk, nk = D, 1
    else:
        tk = max(128, (tk // 128) * 128)      # lane-aligned streaming tiles
        nk = _cdiv(D, tk)

    # --- batch tile tm from the remaining budget ---
    weight_bytes = 2 * tk * H * w_bytes + const_w
    per_row = 2 * tk * x_bytes + 2 * E * x_bytes + 2 * O * 4 + H * 4
    remaining = max(budget - weight_bytes, per_row * row)
    tm = max(row, min(block_b, (remaining // per_row) // row * row))
    b_need = _round_up(B, row)
    tm = min(tm, b_need)
    # Prefer >= 2 batch grid steps so v7x's second TensorCore gets work (neutral on v5e/v6e).
    if tm >= b_need and b_need >= 2 * row:
        tm = _round_up(_cdiv(b_need, 2), row)
    return tm, tk, nk


def projector_apply(x, stats, fused, *, block_b=2048, block_k=None, vmem_budget_bytes=None):
    B, S, E = x.shape
    wa, ws, b1, w2 = fused["wa"], fused["ws"], fused["b1"], fused["w2"]
    D, H = wa.shape
    O = w2.shape[1]
    assert D == S * E and ws.shape == (E, H) and stats.shape == (B, 1, E)

    cdtype = wa.dtype
    x_bytes = jnp.dtype(cdtype).itemsize
    budget = int(vmem_budget_bytes) if vmem_budget_bytes is not None else _vmem_budget_bytes()
    tm, tk, nk = _select_tiles(B, D, E, H, O, x_bytes, x_bytes, budget, block_b, block_k)

    x2 = x.reshape(B, D).astype(cdtype)       # contiguous reshape; bf16 cast feeds the MXU
    st2 = stats.reshape(B, E).astype(cdtype)

    dp = nk * tk
    if dp != D:
        # Only when a streamed contraction tile does not divide D: zero-pad the contraction
        # axis (zeros add nothing to the accumulator).  Batch rows are never padded.
        x2 = jnp.pad(x2, ((0, 0), (0, dp - D)))
        wa = jnp.pad(wa, ((0, dp - D), (0, 0)))

    grid = (_cdiv(B, tm), nk)   # partial batch edge blocks are masked by Pallas

    def run(single_buffer_weights):
        def const_spec(shape):
            idx = lambda i, k: (0,) * len(shape)
            if single_buffer_weights:
                return pl.BlockSpec(shape, idx, pipeline_mode=pl.Buffered(1))
            return pl.BlockSpec(shape, idx)

        if nk == 1:
            wa_spec = const_spec((tk, H))                           # resident fused weight
        else:
            wa_spec = pl.BlockSpec((tk, H), lambda i, k: (k, 0))    # streamed over reduction

        return pl.pallas_call(
            projector_kernel,
            out_shape=jax.ShapeDtypeStruct((B, O), jnp.float32),
            grid_spec=pltpu.PrefetchScalarGridSpec(
                num_scalar_prefetch=0,
                grid=grid,
                in_specs=[
                    pl.BlockSpec((tm, tk), lambda i, k: (i, k)),    # x tile (pipelined DMA)
                    pl.BlockSpec((tm, E), lambda i, k: (i, 0)),     # stats tile
                    wa_spec,                                        # fused conv+Linear1 weight
                    const_spec((E, H)),                             # Linear1 stats weight
                    const_spec((1, H)),                             # Linear1 bias (f32)
                    const_spec((H, O)),                             # Linear2 weight
                ],
                out_specs=pl.BlockSpec((tm, O), lambda i, k: (i, 0)),
                scratch_shapes=[pltpu.VMEM((tm, H), jnp.float32)],  # f32 accumulator
            ),
            compiler_params=pltpu.CompilerParams(
                dimension_semantics=("parallel", "arbitrary"),
                vmem_limit_bytes=int(budget),
            ),
            cost_estimate=pl.CostEstimate(
                flops=2 * B * (D * H + E * H + H * O),
                transcendentals=B * H,
                bytes_accessed=(B * (dp + E) * x_bytes + B * O * 4
                                + (dp * H + E * H + H * O) * x_bytes + H * 4),
            ),
        )(x2, st2, wa, ws, b1, w2)

    try:
        return run(True)      # single-buffer constant-index weights (halves their VMEM footprint)
    except Exception:
        return run(False)     # this jax/libtpu rejects pl.Buffered(1) -> default double buffering


def projector(x, stats, conv_w, w1, b1, w2, *, compute_dtype=jnp.bfloat16, **kwargs):
    """Convenience wrapper.  For inference, call fuse_projector_weights once and reuse it."""
    fused = fuse_projector_weights(conv_w, w1, b1, w2, compute_dtype=compute_dtype)
    return projector_apply(x, stats, fused, **kwargs)


def _reference(x, stats, conv_w, w1, b1, w2):
    # Pure-JAX f32 reference following the PyTorch op order (conv -> cat -> linear -> gelu -> linear).
    K = conv_w.shape[1]
    pad = 1
    conv = sum(jnp.sum(jnp.roll(x, pad - k, axis=-1) * conv_w[None, :, k:k + 1], axis=1)
               for k in range(K))                               # (B, E)
    feat = jnp.concatenate([conv, stats[:, 0, :]], axis=-1)     # (B, 2E)
    h = _gelu_tanh(feat @ w1 + b1[None, :])
    return h @ w2


if __name__ == "__main__":
    def make_case(key, B, S, E, H, O, K=3):
        kx, ks, kc, k1, kb, k2 = jax.random.split(key, 6)
        x = jax.random.normal(kx, (B, S, E), dtype=jnp.float32)
        stats = jax.random.normal(ks, (B, 1, E), dtype=jnp.float32)
        conv_w = 0.1 * jax.random.normal(kc, (S, K), dtype=jnp.float32)
        w1 = 0.1 * jax.random.normal(k1, (2 * E, H), dtype=jnp.float32)
        b1 = 0.1 * jax.random.normal(kb, (H,), dtype=jnp.float32)
        w2 = 0.1 * jax.random.normal(k2, (H, O), dtype=jnp.float32)   # no bias
        return x, stats, conv_w, w1, b1, w2

    key1, key2 = jax.random.split(jax.random.PRNGKey(0))

    # Case 1: resident-weight path (single reduction step), small shapes.
    x, stats, cw, w1, b1, w2 = make_case(key1, B=16, S=8, E=16, H=32, O=16)
    fused = fuse_projector_weights(cw, w1, b1, w2)   # one-time host-side fusion
    out = projector_apply(x, stats, fused)
    jax.block_until_ready(out)
    ref = _reference(x, stats, cw, w1, b1, w2)
    assert out.shape == ref.shape
    assert jnp.allclose(out, ref, atol=3e-2, rtol=3e-2), (
        f"case1 mismatch: max abs err {jnp.max(jnp.abs(out - ref))}")

    # Case 2: force the streamed-reduction path: grid = (2 batch tiles, 3 k tiles) with accumulator.
    x, stats, cw, w1, b1, w2 = make_case(key2, B=32, S=8, E=48, H=64, O=8)
    out = projector(x, stats, cw, w1, b1, w2, block_b=16, block_k=128)
    jax.block_until_ready(out)
    ref = _reference(x, stats, cw, w1, b1, w2)
    assert jnp.allclose(out, ref, atol=3e-2, rtol=3e-2), (
        f"case2 mismatch: max abs err {jnp.max(jnp.abs(out - ref))}")

    print("KERNEL_OK")
</pallas_src>

<mosaic_0001>
module attributes {stable_mosaic.version = 11 : i64} {
  func.func @projector_kernel(%arg0: i32, %arg1: i32, %arg2: memref<16x128xbf16, #tpu.memory_space<vmem>>, %arg3: memref<16x16xbf16, #tpu.memory_space<vmem>>, %arg4: memref<128x32xbf16, #tpu.memory_space<vmem>>, %arg5: memref<16x32xbf16, #tpu.memory_space<vmem>>, %arg6: memref<1x32xf32, #tpu.memory_space<vmem>>, %arg7: memref<32x16xbf16, #tpu.memory_space<vmem>>, %arg8: memref<16x16xf32, #tpu.memory_space<vmem>>, %arg9: memref<16x32xf32, #tpu.memory_space<vmem>>) attributes {dimension_semantics = [#tpu.dimension_semantics<parallel>, #tpu.dimension_semantics<arbitrary>], iteration_bounds = array<i64: 1, 1>, scalar_prefetch = 0 : i64, scratch_operands = 1 : i64, tpu.core_type = #tpu.core_type<tc>, window_params = [{transform_indices = @transform_0, window_bounds = array<i64: 16, 128>}, {transform_indices = @transform_1, window_bounds = array<i64: 16, 16>}, {pipeline_mode = #tpu.pipeline_mode<synchronous>, transform_indices = @transform_2, window_bounds = array<i64: 128, 32>}, {pipeline_mode = #tpu.pipeline_mode<synchronous>, transform_indices = @transform_3, window_bounds = array<i64: 16, 32>}, {pipeline_mode = #tpu.pipeline_mode<synchronous>, transform_indices = @transform_4, window_bounds = array<i64: 1, 32>}, {pipeline_mode = #tpu.pipeline_mode<synchronous>, transform_indices = @transform_5, window_bounds = array<i64: 32, 16>}, {transform_indices = @transform_6, window_bounds = array<i64: 16, 16>}]} {
    %c0_i32 = arith.constant 0 : i32
    %0 = arith.cmpi eq, %arg1, %c0_i32 : i32
    %1 = arith.extui %0 : i1 to i32
    %c0_i32_0 = arith.constant 0 : i32
    %2 = arith.cmpi ne, %1, %c0_i32_0 : i32
    scf.if %2 {
      %cst_10 = arith.constant 0.000000e+00 : f32
      %12 = vector.broadcast %cst_10 : f32 to vector<16x32xf32>
      %c0_11 = arith.constant 0 : index
      %c0_12 = arith.constant 0 : index
      %13 = vector.load %arg9[%c0_11, %c0_12] : memref<16x32xf32, #tpu.memory_space<vmem>>, vector<16x32xf32>
      tpu.vector_store %arg9[%c0_11, %c0_12], %12 {strides = array<i32>} : memref<16x32xf32, #tpu.memory_space<vmem>>, vector<16x32xf32>,
    } else {
    }
    %c0 = arith.constant 0 : index
    %c0_1 = arith.constant 0 : index
    %3 = vector.load %arg9[%c0, %c0_1] : memref<16x32xf32, #tpu.memory_space<vmem>>, vector<16x32xf32>
    %c0_2 = arith.constant 0 : index
    %c0_3 = arith.constant 0 : index
    %4 = vector.load %arg2[%c0_2, %c0_3] : memref<16x128xbf16, #tpu.memory_space<vmem>>, vector<16x128xbf16>
    %c0_4 = arith.constant 0 : index
    %c0_5 = arith.constant 0 : index
    %5 = vector.load %arg4[%c0_4, %c0_5] : memref<128x32xbf16, #tpu.memory_space<vmem>>, vector<128x32xbf16>
    %cst = arith.constant dense<0.000000e+00> : vector<16x32xf32>
    %6 = tpu.matmul %4, %5, %cst {dimension_numbers = #tpu.dot_dimension_numbers<[1], [0], [0], [1], [0, 0, 1, 1], [], []>} : vector<16x128xbf16>, vector<128x32xbf16>, vector<16x32xf32> -> vector<16x32xf32>
    %7 = arith.addf %3, %6 : vector<16x32xf32>
    %c0_6 = arith.constant 0 : index
    %c0_7 = arith.constant 0 : index
    %8 = vector.load %arg9[%c0_6, %c0_7] : memref<16x32xf32, #tpu.memory_space<vmem>>, vector<16x32xf32>
    tpu.vector_store %arg9[%c0_6, %c0_7], %7 {strides = array<i32>} : memref<16x32xf32, #tpu.memory_space<vmem>>, vector<16x32xf32>,
    %c0_i32_8 = arith.constant 0 : i32
    %9 = arith.cmpi eq, %arg1, %c0_i32_8 : i32
    %10 = arith.extui %9 : i1 to i32
    %c0_i32_9 = arith.constant 0 : i32
    %11 = arith.cmpi ne, %10, %c0_i32_9 : i32
    scf.if %11 {
      %c0_10 = arith.constant 0 : index
      %c0_11 = arith.constant 0 : index
      %12 = vector.load %arg9[%c0_10, %c0_11] : memref<16x32xf32, #tpu.memory_space<vmem>>, vector<16x32xf32>
      %c0_12 = arith.constant 0 : index
      %c0_13 = arith.constant 0 : index
      %13 = vector.load %arg3[%c0_12, %c0_13] : memref<16x16xbf16, #tpu.memory_space<vmem>>, vector<16x16xbf16>
      %c0_14 = arith.constant 0 : index
      %c0_15 = arith.constant 0 : index
      %14 = vector.load %arg5[%c0_14, %c0_15] : memref<16x32xbf16, #tpu.memory_space<vmem>>, vector<16x32xbf16>
      %cst_16 = arith.constant dense<0.000000e+00> : vector<16x32xf32>
      %15 = tpu.matmul %13, %14, %cst_16 {dimension_numbers = #tpu.dot_dimension_numbers<[1], [0], [0], [1], [0, 0, 1, 1], [], []>} : vector<16x16xbf16>, vector<16x32xbf16>, vector<16x32xf32> -> vector<16x32xf32>
      %16 = arith.addf %12, %15 : vector<16x32xf32>
      %c0_17 = arith.constant 0 : index
      %c0_18 = arith.constant 0 : index
      %17 = vector.load %arg6[%c0_17, %c0_18] : memref<1x32xf32, #tpu.memory_space<vmem>>, vector<1x32xf32>
      %18 = vector.broadcast %17 : vector<1x32xf32> to vector<16x32xf32>
      %19 = arith.addf %16, %18 : vector<16x32xf32>
      %cst_19 = arith.constant 5.000000e-01 : f32
      %20 = vector.broadcast %cst_19 : f32 to vector<16x32xf32>
      %21 = arith.mulf %20, %19 : vector<16x32xf32>
      %cst_20 = arith.constant 4.471500e-02 : f32
      %22 = vector.broadcast %cst_20 : f32 to vector<16x32xf32>
      %23 = arith.mulf %22, %19 : vector<16x32xf32>
      %24 = arith.mulf %23, %19 : vector<16x32xf32>
      %25 = arith.mulf %24, %19 : vector<16x32xf32>
      %26 = arith.addf %19, %25 : vector<16x32xf32>
      %cst_21 = arith.constant 0.797884583 : f32
      %27 = vector.broadcast %cst_21 : f32 to vector<16x32xf32>
      %28 = arith.mulf %27, %26 : vector<16x32xf32>
      %29 = math.tanh %28 : vector<16x32xf32>
      %cst_22 = arith.constant 1.000000e+00 : f32
      %30 = vector.broadcast %cst_22 : f32 to vector<16x32xf32>
      %31 = arith.addf %30, %29 : vector<16x32xf32>
      %32 = arith.mulf %21, %31 : vector<16x32xf32>
      %33 = arith.truncf %32 : vector<16x32xf32> to vector<16x32xbf16>
      %c0_23 = arith.constant 0 : index
      %c0_24 = arith.constant 0 : index
      %34 = vector.load %arg7[%c0_23, %c0_24] : memref<32x16xbf16, #tpu.memory_space<vmem>>, vector<32x16xbf16>
      %cst_25 = arith.constant dense<0.000000e+00> : vector<16x16xf32>
      %35 = tpu.matmul %33, %34, %cst_25 {dimension_numbers = #tpu.dot_dimension_numbers<[1], [0], [0], [1], [0, 0, 1, 1], [], []>} : vector<16x32xbf16>, vector<32x16xbf16>, vector<16x16xf32> -> vector<16x16xf32>
      %c0_26 = arith.constant 0 : index
      %c0_27 = arith.constant 0 : index
      %36 = vector.load %arg8[%c0_26, %c0_27] : memref<16x16xf32, #tpu.memory_space<vmem>>, vector<16x16xf32>
      tpu.vector_store %arg8[%c0_26, %c0_27], %35 {strides = array<i32>} : memref<16x16xf32, #tpu.memory_space<vmem>>, vector<16x16xf32>,
    } else {
    }
    return
  }
  func.func @transform_0(%arg0: i32, %arg1: i32) -> (i32, i32) {
    %c0_i32 = arith.constant 0 : i32
    return %arg0, %arg1 : i32, i32
  }
  func.func @transform_1(%arg0: i32, %arg1: i32) -> (i32, i32) {
    %c0_i32 = arith.constant 0 : i32
    %c0_i32_0 = arith.constant 0 : i32
    return %arg0, %c0_i32 : i32, i32
  }
  func.func @transform_2(%arg0: i32, %arg1: i32) -> (i32, i32) {
    %c0_i32 = arith.constant 0 : i32
    %c0_i32_0 = arith.constant 0 : i32
    %c0_i32_1 = arith.constant 0 : i32
    return %c0_i32, %c0_i32_0 : i32, i32
  }
  func.func @transform_3(%arg0: i32, %arg1: i32) -> (i32, i32) {
    %c0_i32 = arith.constant 0 : i32
    %c0_i32_0 = arith.constant 0 : i32
    %c0_i32_1 = arith.constant 0 : i32
    return %c0_i32, %c0_i32_0 : i32, i32
  }
  func.func @transform_4(%arg0: i32, %arg1: i32) -> (i32, i32) {
    %c0_i32 = arith.constant 0 : i32
    %c0_i32_0 = arith.constant 0 : i32
    %c0_i32_1 = arith.constant 0 : i32
    return %c0_i32, %c0_i32_0 : i32, i32
  }
  func.func @transform_5(%arg0: i32, %arg1: i32) -> (i32, i32) {
    %c0_i32 = arith.constant 0 : i32
    %c0_i32_0 = arith.constant 0 : i32
    %c0_i32_1 = arith.constant 0 : i32
    return %c0_i32, %c0_i32_0 : i32, i32
  }
  func.func @transform_6(%arg0: i32, %arg1: i32) -> (i32, i32) {
    %c0_i32 = arith.constant 0 : i32
    %c0_i32_0 = arith.constant 0 : i32
    return %arg0, %c0_i32 : i32, i32
  }
}

module attributes {stable_mosaic.version = 11 : i64} {
  func.func @projector_kernel(%arg0: i32, %arg1: i32, %arg2: memref<16x128xbf16, #tpu.memory_space<vmem>>, %arg3: memref<16x16xbf16, #tpu.memory_space<vmem>>, %arg4: memref<128x32xbf16, #tpu.memory_space<vmem>>, %arg5: memref<16x32xbf16, #tpu.memory_space<vmem>>, %arg6: memref<1x32xf32, #tpu.memory_space<vmem>>, %arg7: memref<32x16xbf16, #tpu.memory_space<vmem>>, %arg8: memref<16x16xf32, #tpu.memory_space<vmem>>, %arg9: memref<16x32xf32, #tpu.memory_space<vmem>>) attributes {dimension_semantics = [#tpu.dimension_semantics<parallel>, #tpu.dimension_semantics<arbitrary>], iteration_bounds = array<i64: 1, 1>, scalar_prefetch = 0 : i64, scratch_operands = 1 : i64, tpu.core_type = #tpu.core_type<tc>, window_params = [{transform_indices = @transform_0, window_bounds = array<i64: 16, 128>}, {transform_indices = @transform_1, window_bounds = array<i64: 16, 16>}, {pipeline_mode = #tpu.pipeline_mode<synchronous>, transform_indices = @transform_2, window_bounds = array<i64: 128, 32>}, {pipeline_mode = #tpu.pipeline_mode<synchronous>, transform_indices = @transform_3, window_bounds = array<i64: 16, 32>}, {pipeline_mode = #tpu.pipeline_mode<synchronous>, transform_indices = @transform_4, window_bounds = array<i64: 1, 32>}, {pipeline_mode = #tpu.pipeline_mode<synchronous>, transform_indices = @transform_5, window_bounds = array<i64: 32, 16>}, {transform_indices = @transform_6, window_bounds = array<i64: 16, 16>}]} {
    %c0_i32 = arith.constant 0 : i32
    %0 = arith.cmpi eq, %arg1, %c0_i32 : i32
    %1 = arith.extui %0 : i1 to i32
    %c0_i32_0 = arith.constant 0 : i32
    %2 = arith.cmpi ne, %1, %c0_i32_0 : i32
    scf.if %2 {
      %cst_10 = arith.constant 0.000000e+00 : f32
      %12 = vector.broadcast %cst_10 : f32 to vector<16x32xf32>
      %c0_11 = arith.constant 0 : index
      %c0_12 = arith.constant 0 : index
      %13 = vector.load %arg9[%c0_11, %c0_12] : memref<16x32xf32, #tpu.memory_space<vmem>>, vector<16x32xf32>
      tpu.vector_store %arg9[%c0_11, %c0_12], %12 {strides = array<i32>} : memref<16x32xf32, #tpu.memory_space<vmem>>, vector<16x32xf32>,
    } else {
    }
    %c0 = arith.constant 0 : index
    %c0_1 = arith.constant 0 : index
    %3 = vector.load %arg9[%c0, %c0_1] : memref<16x32xf32, #tpu.memory_space<vmem>>, vector<16x32xf32>
    %c0_2 = arith.constant 0 : index
    %c0_3 = arith.constant 0 : index
    %4 = vector.load %arg2[%c0_2, %c0_3] : memref<16x128xbf16, #tpu.memory_space<vmem>>, vector<16x128xbf16>
    %c0_4 = arith.constant 0 : index
    %c0_5 = arith.constant 0 : index
    %5 = vector.load %arg4[%c0_4, %c0_5] : memref<128x32xbf16, #tpu.memory_space<vmem>>, vector<128x32xbf16>
    %cst = arith.constant dense<0.000000e+00> : vector<16x32xf32>
    %6 = tpu.matmul %4, %5, %cst {dimension_numbers = #tpu.dot_dimension_numbers<[1], [0], [0], [1], [0, 0, 1, 1], [], []>} : vector<16x128xbf16>, vector<128x32xbf16>, vector<16x32xf32> -> vector<16x32xf32>
    %7 = arith.addf %3, %6 : vector<16x32xf32>
    %c0_6 = arith.constant 0 : index
    %c0_7 = arith.constant 0 : index
    %8 = vector.load %arg9[%c0_6, %c0_7] : memref<16x32xf32, #tpu.memory_space<vmem>>, vector<16x32xf32>
    tpu.vector_store %arg9[%c0_6, %c0_7], %7 {strides = array<i32>} : memref<16x32xf32, #tpu.memory_space<vmem>>, vector<16x32xf32>,
    %c0_i32_8 = arith.constant 0 : i32
    %9 = arith.cmpi eq, %arg1, %c0_i32_8 : i32
    %10 = arith.extui %9 : i1 to i32
    %c0_i32_9 = arith.constant 0 : i32
    %11 = arith.cmpi ne, %10, %c0_i32_9 : i32
    scf.if %11 {
      %c0_10 = arith.constant 0 : index
      %c0_11 = arith.constant 0 : index
      %12 = vector.load %arg9[%c0_10, %c0_11] : memref<16x32xf32, #tpu.memory_space<vmem>>, vector<16x32xf32>
      %c0_12 = arith.constant 0 : index
      %c0_13 = arith.constant 0 : index
      %13 = vector.load %arg3[%c0_12, %c0_13] : memref<16x16xbf16, #tpu.memory_space<vmem>>, vector<16x16xbf16>
      %c0_14 = arith.constant 0 : index
      %c0_15 = arith.constant 0 : index
      %14 = vector.load %arg5[%c0_14, %c0_15] : memref<16x32xbf16, #tpu.memory_space<vmem>>, vector<16x32xbf16>
      %cst_16 = arith.constant dense<0.000000e+00> : vector<16x32xf32>
      %15 = tpu.matmul %13, %14, %cst_16 {dimension_numbers = #tpu.dot_dimension_numbers<[1], [0], [0], [1], [0, 0, 1, 1], [], []>} : vector<16x16xbf16>, vector<16x32xbf16>, vector<16x32xf32> -> vector<16x32xf32>
      %16 = arith.addf %12, %15 : vector<16x32xf32>
      %c0_17 = arith.constant 0 : index
      %c0_18 = arith.constant 0 : index
      %17 = vector.load %arg6[%c0_17, %c0_18] : memref<1x32xf32, #tpu.memory_space<vmem>>, vector<1x32xf32>
      %18 = vector.broadcast %17 : vector<1x32xf32> to vector<16x32xf32>
      %19 = arith.addf %16, %18 : vector<16x32xf32>
      %cst_19 = arith.constant 5.000000e-01 : f32
      %20 = vector.broadcast %cst_19 : f32 to vector<16x32xf32>
      %21 = arith.mulf %20, %19 : vector<16x32xf32>
      %cst_20 = arith.constant 4.471500e-02 : f32
      %22 = vector.broadcast %cst_20 : f32 to vector<16x32xf32>
      %23 = arith.mulf %22, %19 : vector<16x32xf32>
      %24 = arith.mulf %23, %19 : vector<16x32xf32>
      %25 = arith.mulf %24, %19 : vector<16x32xf32>
      %26 = arith.addf %19, %25 : vector<16x32xf32>
      %cst_21 = arith.constant 0.797884583 : f32
      %27 = vector.broadcast %cst_21 : f32 to vector<16x32xf32>
      %28 = arith.mulf %27, %26 : vector<16x32xf32>
      %29 = math.tanh %28 : vector<16x32xf32>
      %cst_22 = arith.constant 1.000000e+00 : f32
      %30 = vector.broadcast %cst_22 : f32 to vector<16x32xf32>
      %31 = arith.addf %30, %29 : vector<16x32xf32>
      %32 = arith.mulf %21, %31 : vector<16x32xf32>
      %33 = arith.truncf %32 : vector<16x32xf32> to vector<16x32xbf16>
      %c0_23 = arith.constant 0 : index
      %c0_24 = arith.constant 0 : index
      %34 = vector.load %arg7[%c0_23, %c0_24] : memref<32x16xbf16, #tpu.memory_space<vmem>>, vector<32x16xbf16>
      %cst_25 = arith.constant dense<0.000000e+00> : vector<16x16xf32>
      %35 = tpu.matmul %33, %34, %cst_25 {dimension_numbers = #tpu.dot_dimension_numbers<[1], [0], [0], [1], [0, 0, 1, 1], [], []>} : vector<16x32xbf16>, vector<32x16xbf16>, vector<16x16xf32> -> vector<16x16xf32>
      %c0_26 = arith.constant 0 : index
      %c0_27 = arith.constant 0 : index
      %36 = vector.load %arg8[%c0_26, %c0_27] : memref<16x16xf32, #tpu.memory_space<vmem>>, vector<16x16xf32>
      tpu.vector_store %arg8[%c0_26, %c0_27], %35 {strides = array<i32>} : memref<16x16xf32, #tpu.memory_space<vmem>>, vector<16x16xf32>,
    } else {
    }
    return
  }
  func.func @transform_0(%arg0: i32, %arg1: i32) -> (i32, i32) {
    %c0_i32 = arith.constant 0 : i32
    return %arg0, %arg1 : i32, i32
  }
  func.func @transform_1(%arg0: i32, %arg1: i32) -> (i32, i32) {
    %c0_i32 = arith.constant 0 : i32
    %c0_i32_0 = arith.constant 0 : i32
    return %arg0, %c0_i32 : i32, i32
  }
  func.func @transform_2(%arg0: i32, %arg1: i32) -> (i32, i32) {
    %c0_i32 = arith.constant 0 : i32
    %c0_i32_0 = arith.constant 0 : i32
    %c0_i32_1 = arith.constant 0 : i32
    return %c0_i32, %c0_i32_0 : i32, i32
  }
  func.func @transform_3(%arg0: i32, %arg1: i32) -> (i32, i32) {
    %c0_i32 = arith.constant 0 : i32
    %c0_i32_0 = arith.constant 0 : i32
    %c0_i32_1 = arith.constant 0 : i32
    return %c0_i32, %c0_i32_0 : i32, i32
  }
  func.func @transform_4(%arg0: i32, %arg1: i32) -> (i32, i32) {
    %c0_i32 = arith.constant 0 : i32
    %c0_i32_0 = arith.constant 0 : i32
    %c0_i32_1 = arith.constant 0 : i32
    return %c0_i32, %c0_i32_0 : i32, i32
  }
  func.func @transform_5(%arg0: i32, %arg1: i32) -> (i32, i32) {
    %c0_i32 = arith.constant 0 : i32
    %c0_i32_0 = arith.constant 0 : i32
    %c0_i32_1 = arith.constant 0 : i32
    return %c0_i32, %c0_i32_0 : i32, i32
  }
  func.func @transform_6(%arg0: i32, %arg1: i32) -> (i32, i32) {
    %c0_i32 = arith.constant 0 : i32
    %c0_i32_0 = arith.constant 0 : i32
    return %arg0, %c0_i32 : i32, i32
  }
}

</mosaic_0001>

<bundles_post_ra>
// kernel: tpu_custom_call.1
= control target key start
LH: loop header
LB: loop body
LE: loop exit
PB: predicated region body
PF: predicated region fallthrough
CT: control target
= control target key end

     0   :  { %v435_v1 = vmov 0.0   ;;  %vm436_vm0 = vmmov 0   ;;  %vm29_vm1 = vcmask 261120   ;;  %vm172_vm2 = vcmask 130048   ;;  %s540_s0 = inlined_call_operand.vmem [shape: bf16[16,128], index: 0, kind: input, shape index: {}]   ;;  %s541_s1 = inlined_call_operand.vmem [shape: bf16[16,16], index: 1, kind: input, shape index: {}]   ;;  %s542_s2 = inlined_call_operand.vmem [shape: bf16[128,32], index: 2, kind: input, shape index: {}]   ;;  %s543_s3 = inlined_call_operand.vmem [shape: bf16[16,32], index: 3, kind: input, shape index: {}]   ;;  %s544_s4 = inlined_call_operand.vmem [shape: f32[1,32], index: 4, kind: input, shape index: {}]   ;;  %s545_s5 = inlined_call_operand.vmem [shape: bf16[32,16], index: 5, kind: input, shape index: {}]   ;;  %s546_s6 = inlined_call_operand.hbm [shape: f32[16,16], index: 6, kind: output, shape index: {}]  }
   0x1   :  { %v394_v0 = vld [vmem:[%s542_s2] sm:$0xff]   ;;  %355 = vmatprep.subr.bf16.mxu0 %v435_v1  ;;  %375 = vmatprep.subr.bf16.mxu1 %v435_v1  ;;  %v395_v2 = vld [vmem:[%s542_s2 + $0x8] sm:$0xff]   ;;  %30 = vst.msk [vmem:[#allocation2] sm:$0xff] %vm29_vm1, %v435_v1  ;;  %31 = vst.msk [vmem:[#allocation2 + $0x8] sm:$0xff] %vm29_vm1, %v435_v1 }
   0x2   :  { %356 = vmatpush3.bf16.msra.mxu0 %v394_v0  ;;  %371 = vmatprep.mubr.msk.bf16.mxu0 %vm436_vm0, %v435_v1  ;;  %v396_v3 = vld [vmem:[%s542_s2 + $0x10] sm:$0xff]   ;;  %v397_v4 = vld [vmem:[%s542_s2 + $0x18] sm:$0xff]   ;;  %v403_v5 = vld [vmem:[%s543_s3] sm:$0xff]  }
   0x3   :  { %357 = vmatprep.subr.bf16.mxu0 %v435_v1  ;;  %377 = vmatprep.mubr.msk.bf16.mxu1 %vm436_vm0, %v435_v1  ;;  %v404_v6 = vld [vmem:[%s541_s1] sm:$0xff]  }
   0x4   :  { %376 = vmatpush3.bf16.msra.mxu1 %v403_v5 }
   0x5   :  { %381 = vmatprep.subr.bf16.mxu1 %v435_v1 }
   0x6   :  { %358 = vmatpush3.bf16.msra.mxu0 %v395_v2 }
   0x7   :  { %359 = vmatprep.subr.bf16.mxu0 %v435_v1 }
   0xa   :  { %360 = vmatpush3.bf16.msra.mxu0 %v396_v3 }
   0xb   :  { %361 = vmatprep.subr.bf16.mxu0 %v435_v1 }
   0xc   :  { %11 = vsyncpa [#allocation4], 0  ;;  %v398_v7 = vld [vmem:[%s542_s2 + $0x20] sm:$0xff]   ;;  %378 = vmatmul.mubr.msk.bf16.vlgmr.msra.gmra.mrb[0].mxu1 %vm172_vm2, %v404_v6  ;;  %v399_v8 = vld [vmem:[%s542_s2 + $0x28] sm:$0xff]  }
   0xd   :  { %385 = vmatprep.mubr.msk.bf16.mxu1 %vm436_vm0, %v435_v1  ;;  %v400_v9 = vld [vmem:[%s542_s2 + $0x30] sm:$0xff]   ;;  %v401_v10 = vld [vmem:[%s542_s2 + $0x38] sm:$0xff]   ;;  %v402_v11 = vld [vmem:[%s540_s0] sm:$0xff]  }
   0xe   :  { %362 = vmatpush3.bf16.msra.mxu0 %v397_v4  ;;  %v405_v12 = vld [vmem:[%s545_s5] sm:$0xff]   ;;  %v406_v13 = vld [vmem:[%s545_s5 + $0x8] sm:$0xff]  }
   0xf   :  { %363 = vmatprep.subr.bf16.mxu0 %v435_v1  ;;  %382 = vmatpush3.bf16.msra.mxu1 %v405_v12  ;;  %v32_v18 = vld [vmem:[#allocation2] sm:$0xff]  ;;  %v33_v20 = vld [vmem:[#allocation2 + $0x8] sm:$0xff] }
  0x10   :  { %383 = vmatprep.subr.bf16.mxu1 %v435_v1  ;;  %v337_v27 = vld [vmem:[%s544_s4] ss:$0 sm:$0xff]  ;;  %s437_s4 = smov [#allocation3]  }
  0x11   :  { %s314_s5 = sshll.u32 %s437_s4, 4  ;;  %s315_s5 = int_to_ptr.vmem [resolvable:$true] %s314_s5 }
  0x12   :  { %364 = vmatpush3.bf16.msra.mxu0 %v398_v7  ;;  %s411_s21 = scalar_lea.vmem %s315_s5, 256  ;;  %p416_p1 = scmp.lt.s32.totalorder %s315_s5, %s315_s5 }
  0x13   :  { %365 = vmatprep.subr.bf16.mxu0 %v435_v1  ;;  %384 = vmatpush3.bf16.msra.mxu1 %v406_v13  ;;  %p412_p0 = scmp.ne.s32.totalorder %s315_s5, %s411_s21  ;;  %p417_p2 = scmp.lt.s32.totalorder %s411_s21, %s411_s21 }
  0x15   :  { %p418_p3 = por %p417_p2, %p416_p1 }
  0x16   :  { %366 = vmatpush3.bf16.msra.mxu0 %v399_v8 }
  0x17   :  { %367 = vmatprep.subr.bf16.mxu0 %v435_v1  ;;  %p419_p4 = pnand %p418_p3, %p412_p0 }
  0x1a   :  { %368 = vmatpush3.bf16.msra.mxu0 %v400_v9 }
  0x1b   :  { %369 = vmatprep.subr.bf16.mxu0 %v435_v1 }
  0x1e   :  { %370 = vmatpush3.bf16.msra.mxu0 %v401_v10 }
  0x21   :  { %372 = vmatmul.mubr.bf16.vlgmr.msra.gmra.mrb[0].mxu0 %v402_v11 }
  0xdf   :  { %v210_v14 = vpop.f32.mrb[0].mxu1 }
  0xe0   :  { %v379_v15 = vpop.f32.mrb[1].mxu1 }
  0xe1   :  { %v213_v16 = vpop.f32.mrb[2].mxu1 }
  0xe2   :  { %v380_v17 = vpop.f32.mrb[3].mxu1 }
  0xf4   :  { %v140_v19 = vpop.f32.mrb[0].mxu0 }
  0xf5   :  { %v147_v21 = vadd.f32 %v140_v19, %v32_v18  ;;  %v373_v22 = vpop.f32.mrb[1].mxu0 }
  0xf6   :  { %v143_v23 = vpop.f32.mrb[2].mxu0 }
  0xf7   :  { %150 = vst.msk [vmem:[#allocation2] sm:$0xff] %vm29_vm1, %v147_v21  ;;  %v148_v24 = vadd.f32 %v143_v23, %v33_v20  ;;  %v374_v25 = vpop.f32.mrb[3].mxu0 }
  0xf9   :  { %151 = vst.msk [vmem:[#allocation2 + $0x8] sm:$0xff] %vm29_vm1, %v148_v24 }
  0xfe   :  { %v155_v26 = vld [vmem:[#allocation2] sm:$0xff] }
  0xff   :  { %v217_v28 = vadd.f32 %v210_v14, %v155_v26 }
 0x100   :  { %v156_v29 = vld [vmem:[#allocation2 + $0x8] sm:$0xff] }
 0x101   :  { %v226_v30 = vadd.f32 %v337_v27, %v217_v28  ;;  %v218_v31 = vadd.f32 %v213_v16, %v156_v29 }
 0x103   :  { %v230_v32 = vmul.f32 0.044715, %v226_v30  ;;  %v227_v33 = vadd.f32 %v337_v27, %v218_v31  ;;  %v228_v46 = vmul.f32 0.5, %v226_v30 }
 0x105   :  { %v232_v34 = vmul.f32 %v230_v32, %v226_v30  ;;  %v231_v35 = vmul.f32 0.044715, %v227_v33  ;;  %v229_v47 = vmul.f32 0.5, %v227_v33 }
 0x107   :  { %v234_v36 = vmul.f32 %v232_v34, %v226_v30  ;;  %v233_v37 = vmul.f32 %v231_v35, %v227_v33 }
 0x109   :  { %v236_v38 = vadd.f32 %v234_v36, %v226_v30  ;;  %v235_v39 = vmul.f32 %v233_v37, %v227_v33 }
 0x10b   :  { %v238_v40 = vmul.f32 0.7978846, %v236_v38  ;;  %v237_v41 = vadd.f32 %v235_v39, %v227_v33 }
 0x10d   :  { %407 = vtanh.f32 %v238_v40  ;;  %v239_v42 = vmul.f32 0.7978846, %v237_v41 }
 0x10f   :  { %409 = vtanh.f32 %v239_v42 }
 0x117   :  { %v408_v43 = vpop.eup %407 }
 0x118   :  { %v242_v44 = vadd.f32 1.0, %v408_v43 }
 0x119   :  { %v410_v45 = vpop.eup %409 }
 0x11a   :  { %v243_v48 = vadd.f32 1.0, %v410_v45  ;;  %v244_v49 = vmul.f32 %v242_v44, %v228_v46 }
 0x11c   :  { %v245_v50 = vmul.f32 %v243_v48, %v229_v47 }
 0x11e   :  { %v246_v51 = vpack.c.bf16 %v245_v50, %v244_v49 }
 0x120   :  { %386 = vmatmul.mubr.msk.bf16.vlgmr.msra.gmra.mrb[4].mxu1 %vm29_vm1, %v246_v51 }
 0x1f3   :  { %v300_v52 = vpop.f32.mrb[4].mxu1 }
 0x1f4   :  { %307 = vst.msk [vmem:[#allocation3] sm:$0xff] %vm172_vm2, %v300_v52  ;;  %v387_v53 = vpop.f32.mrb[5].mxu1 }
 0x1f5   :  { %v303_v54 = vpop.f32.mrb[6].mxu1 }
 0x1f6   :  { %308 = vst.msk [vmem:[#allocation3 + $0x8] sm:$0xff] %vm172_vm2, %v303_v54  ;;  %v388_v55 = vpop.f32.mrb[7].mxu1 }
 0x1f7   :  { %422 = shalt.err (!%p419_p4)
}
 0x1f8   :  { %s423_s24 = scalar_lea.hbm %s546_s6, 256 }
 0x1f9   :  { %p424_p5 = scmp.ne.s32.totalorder %s546_s6, %s423_s24  ;;  %p427_p6 = scmp.lt.u32.totalorder %s423_s24, %s546_s6 }
 0x1fb   :  { %p429_p7 = pnand %p427_p6, %p424_p5 }
 0x1fd   :  { %432 = shalt.err (!%p429_p7)
}
 0x1fe   :  { %s438_s29 = smov 128   ;;  %s439_s30 = smov 8  }
 0x1ff   :  { %320 = dma.vmem_to_hbm [thread:$0]  %s315_s5, 256, %s546_s6, [#allocation4], %s438_s29, %s438_s29, %s439_s30  }
 0x200   :  { %433 = dma.done.wait [#allocation4], 256  }
 0x201   :  { %434 = vsyncadd [#allocation4], 4294967040 }
 0x202   :  { %324 = vsyncpa [#allocation4], 1 }

// kernel: tpu_custom_call.1
= control target key start
LH: loop header
LB: loop body
LE: loop exit
PB: predicated region body
PF: predicated region fallthrough
CT: control target
= control target key end

     0   :  { %v435_v1 = vmov 0.0   ;;  %vm436_vm0 = vmmov 0   ;;  %vm29_vm1 = vcmask 261120   ;;  %vm172_vm2 = vcmask 130048   ;;  %s540_s0 = inlined_call_operand.vmem [shape: bf16[16,128], index: 0, kind: input, shape index: {}]   ;;  %s541_s1 = inlined_call_operand.vmem [shape: bf16[16,16], index: 1, kind: input, shape index: {}]   ;;  %s542_s2 = inlined_call_operand.vmem [shape: bf16[128,32], index: 2, kind: input, shape index: {}]   ;;  %s543_s3 = inlined_call_operand.vmem [shape: bf16[16,32], index: 3, kind: input, shape index: {}]   ;;  %s544_s4 = inlined_call_operand.vmem [shape: f32[1,32], index: 4, kind: input, shape index: {}]   ;;  %s545_s5 = inlined_call_operand.vmem [shape: bf16[32,16], index: 5, kind: input, shape index: {}]   ;;  %s546_s6 = inlined_call_operand.hbm [shape: f32[16,16], index: 6, kind: output, shape index: {}]  }
   0x1   :  { %v394_v0 = vld [vmem:[%s542_s2] sm:$0xff]   ;;  %355 = vmatprep.subr.bf16.mxu0 %v435_v1  ;;  %375 = vmatprep.subr.bf16.mxu1 %v435_v1  ;;  %v395_v2 = vld [vmem:[%s542_s2 + $0x8] sm:$0xff]   ;;  %30 = vst.msk [vmem:[#allocation2] sm:$0xff] %vm29_vm1, %v435_v1  ;;  %31 = vst.msk [vmem:[#allocation2 + $0x8] sm:$0xff] %vm29_vm1, %v435_v1 }
   0x2   :  { %356 = vmatpush3.bf16.msra.mxu0 %v394_v0  ;;  %371 = vmatprep.mubr.msk.bf16.mxu0 %vm436_vm0, %v435_v1  ;;  %v396_v3 = vld [vmem:[%s542_s2 + $0x10] sm:$0xff]   ;;  %v397_v4 = vld [vmem:[%s542_s2 + $0x18] sm:$0xff]   ;;  %v403_v5 = vld [vmem:[%s543_s3] sm:$0xff]  }
   0x3   :  { %357 = vmatprep.subr.bf16.mxu0 %v435_v1  ;;  %377 = vmatprep.mubr.msk.bf16.mxu1 %vm436_vm0, %v435_v1  ;;  %v404_v6 = vld [vmem:[%s541_s1] sm:$0xff]  }
   0x4   :  { %376 = vmatpush3.bf16.msra.mxu1 %v403_v5 }
   0x5   :  { %381 = vmatprep.subr.bf16.mxu1 %v435_v1 }
   0x6   :  { %358 = vmatpush3.bf16.msra.mxu0 %v395_v2 }
   0x7   :  { %359 = vmatprep.subr.bf16.mxu0 %v435_v1 }
   0xa   :  { %360 = vmatpush3.bf16.msra.mxu0 %v396_v3 }
   0xb   :  { %361 = vmatprep.subr.bf16.mxu0 %v435_v1 }
   0xc   :  { %11 = vsyncpa [#allocation4], 0  ;;  %v398_v7 = vld [vmem:[%s542_s2 + $0x20] sm:$0xff]   ;;  %378 = vmatmul.mubr.msk.bf16.vlgmr.msra.gmra.mrb[0].mxu1 %vm172_vm2, %v404_v6  ;;  %v399_v8 = vld [vmem:[%s542_s2 + $0x28] sm:$0xff]  }
   0xd   :  { %385 = vmatprep.mubr.msk.bf16.mxu1 %vm436_vm0, %v435_v1  ;;  %v400_v9 = vld [vmem:[%s542_s2 + $0x30] sm:$0xff]   ;;  %v401_v10 = vld [vmem:[%s542_s2 + $0x38] sm:$0xff]   ;;  %v402_v11 = vld [vmem:[%s540_s0] sm:$0xff]  }
   0xe   :  { %362 = vmatpush3.bf16.msra.mxu0 %v397_v4  ;;  %v405_v12 = vld [vmem:[%s545_s5] sm:$0xff]   ;;  %v406_v13 = vld [vmem:[%s545_s5 + $0x8] sm:$0xff]  }
   0xf   :  { %363 = vmatprep.subr.bf16.mxu0 %v435_v1  ;;  %382 = vmatpush3.bf16.msra.mxu1 %v405_v12  ;;  %v32_v18 = vld [vmem:[#allocation2] sm:$0xff]  ;;  %v33_v20 = vld [vmem:[#allocation2 + $0x8] sm:$0xff] }
  0x10   :  { %383 = vmatprep.subr.bf16.mxu1 %v435_v1  ;;  %v337_v27 = vld [vmem:[%s544_s4] ss:$0 sm:$0xff]  ;;  %s437_s4 = smov [#allocation3]  }
  0x11   :  { %s314_s5 = sshll.u32 %s437_s4, 4  ;;  %s315_s5 = int_to_ptr.vmem [resolvable:$true] %s314_s5 }
  0x12   :  { %364 = vmatpush3.bf16.msra.mxu0 %v398_v7  ;;  %s411_s21 = scalar_lea.vmem %s315_s5, 256  ;;  %p416_p1 = scmp.lt.s32.totalorder %s315_s5, %s315_s5 }
  0x13   :  { %365 = vmatprep.subr.bf16.mxu0 %v435_v1  ;;  %384 = vmatpush3.bf16.msra.mxu1 %v406_v13  ;;  %p412_p0 = scmp.ne.s32.totalorder %s315_s5, %s411_s21  ;;  %p417_p2 = scmp.lt.s32.totalorder %s411_s21, %s411_s21 }
  0x15   :  { %p418_p3 = por %p417_p2, %p416_p1 }
  0x16   :  { %366 = vmatpush3.bf16.msra.mxu0 %v399_v8 }
  0x17   :  { %367 = vmatprep.subr.bf16.mxu0 %v435_v1  ;;  %p419_p4 = pnand %p418_p3, %p412_p0 }
  0x1a   :  { %368 = vmatpush3.bf16.msra.mxu0 %v400_v9 }
  0x1b   :  { %369 = vmatprep.subr.bf16.mxu0 %v435_v1 }
  0x1e   :  { %370 = vmatpush3.bf16.msra.mxu0 %v401_v10 }
  0x21   :  { %372 = vmatmul.mubr.bf16.vlgmr.msra.gmra.mrb[0].mxu0 %v402_v11 }
  0xdf   :  { %v210_v14 = vpop.f32.mrb[0].mxu1 }
  0xe0   :  { %v379_v15 = vpop.f32.mrb[1].mxu1 }
  0xe1   :  { %v213_v16 = vpop.f32.mrb[2].mxu1 }
  0xe2   :  { %v380_v17 = vpop.f32.mrb[3].mxu1 }
  0xf4   :  { %v140_v19 = vpop.f32.mrb[0].mxu0 }
  0xf5   :  { %v147_v21 = vadd.f32 %v140_v19, %v32_v18  ;;  %v373_v22 = vpop.f32.mrb[1].mxu0 }
  0xf6   :  { %v143_v23 = vpop.f32.mrb[2].mxu0 }
  0xf7   :  { %150 = vst.msk [vmem:[#allocation2] sm:$0xff] %vm29_vm1, %v147_v21  ;;  %v148_v24 = vadd.f32 %v143_v23, %v33_v20  ;;  %v374_v25 = vpop.f32.mrb[3].mxu0 }
  0xf9   :  { %151 = vst.msk [vmem:[#allocation2 + $0x8] sm:$0xff] %vm29_vm1, %v148_v24 }
  0xfe   :  { %v155_v26 = vld [vmem:[#allocation2] sm:$0xff] }
  0xff   :  { %v217_v28 = vadd.f32 %v210_v14, %v155_v26 }
 0x100   :  { %v156_v29 = vld [vmem:[#allocation2 + $0x8] sm:$0xff] }
 0x101   :  { %v226_v30 = vadd.f32 %v337_v27, %v217_v28  ;;  %v218_v31 = vadd.f32 %v213_v16, %v156_v29 }
 0x103   :  { %v230_v32 = vmul.f32 0.044715, %v226_v30  ;;  %v227_v33 = vadd.f32 %v337_v27, %v218_v31  ;;  %v228_v46 = vmul.f32 0.5, %v226_v30 }
 0x105   :  { %v232_v34 = vmul.f32 %v230_v32, %v226_v30  ;;  %v231_v35 = vmul.f32 0.044715, %v227_v33  ;;  %v229_v47 = vmul.f32 0.5, %v227_v33 }
 0x107   :  { %v234_v36 = vmul.f32 %v232_v34, %v226_v30  ;;  %v233_v37 = vmul.f32 %v231_v35, %v227_v33 }
 0x109   :  { %v236_v38 = vadd.f32 %v234_v36, %v226_v30  ;;  %v235_v39 = vmul.f32 %v233_v37, %v227_v33 }
 0x10b   :  { %v238_v40 = vmul.f32 0.7978846, %v236_v38  ;;  %v237_v41 = vadd.f32 %v235_v39, %v227_v33 }
 0x10d   :  { %407 = vtanh.f32 %v238_v40  ;;  %v239_v42 = vmul.f32 0.7978846, %v237_v41 }
 0x10f   :  { %409 = vtanh.f32 %v239_v42 }
 0x117   :  { %v408_v43 = vpop.eup %407 }
 0x118   :  { %v242_v44 = vadd.f32 1.0, %v408_v43 }
 0x119   :  { %v410_v45 = vpop.eup %409 }
 0x11a   :  { %v243_v48 = vadd.f32 1.0, %v410_v45  ;;  %v244_v49 = vmul.f32 %v242_v44, %v228_v46 }
 0x11c   :  { %v245_v50 = vmul.f32 %v243_v48, %v229_v47 }
 0x11e   :  { %v246_v51 = vpack.c.bf16 %v245_v50, %v244_v49 }
 0x120   :  { %386 = vmatmul.mubr.msk.bf16.vlgmr.msra.gmra.mrb[4].mxu1 %vm29_vm1, %v246_v51 }
 0x1f3   :  { %v300_v52 = vpop.f32.mrb[4].mxu1 }
 0x1f4   :  { %307 = vst.msk [vmem:[#allocation3] sm:$0xff] %vm172_vm2, %v300_v52  ;;  %v387_v53 = vpop.f32.mrb[5].mxu1 }
 0x1f5   :  { %v303_v54 = vpop.f32.mrb[6].mxu1 }
 0x1f6   :  { %308 = vst.msk [vmem:[#allocation3 + $0x8] sm:$0xff] %vm172_vm2, %v303_v54  ;;  %v388_v55 = vpop.f32.mrb[7].mxu1 }
 0x1f7   :  { %422 = shalt.err (!%p419_p4)
}
 0x1f8   :  { %s423_s24 = scalar_lea.hbm %s546_s6, 256 }
 0x1f9   :  { %p424_p5 = scmp.ne.s32.totalorder %s546_s6, %s423_s24  ;;  %p427_p6 = scmp.lt.u32.totalorder %s423_s24, %s546_s6 }
 0x1fb   :  { %p429_p7 = pnand %p427_p6, %p424_p5 }
 0x1fd   :  { %432 = shalt.err (!%p429_p7)
}
 0x1fe   :  { %s438_s29 = smov 128   ;;  %s439_s30 = smov 8  }
 0x1ff   :  { %320 = dma.vmem_to_hbm [thread:$0]  %s315_s5, 256, %s546_s6, [#allocation4], %s438_s29, %s438_s29, %s439_s30  }
 0x200   :  { %433 = dma.done.wait [#allocation4], 256  }
 0x201   :  { %434 = vsyncadd [#allocation4], 4294967040 }
 0x202   :  { %324 = vsyncpa [#allocation4], 1 }

</bundles_post_ra>
